<compile_context>
chip_gen: v7x
topology: tpu7x:2x2x1
jax: 0.10.0
libtpu: 0.0.40
codegen_flags: <defaults>
</compile_context>

<pallas_src>
import functools

import jax
import jax.numpy as jnp
from jax import lax
from jax.experimental import pallas as pl
from jax.experimental.pallas import tpu as pltpu


def _resnet_block_kernel(x_ref, mask_ref, w0_ref, b0_ref, w1_ref, b1_ref,
                         *rest, H, W, learned_shortcut):
    """One batch element per grid step.

    x_ref:    (1, Cin, Np)      input, spatially padded by 1, flattened (Np = (H+2)*(W+2))
    mask_ref: (1, Np)           1.0 on the interior of the padded frame, 0.0 on its border
    w0_ref:   (Chid, 9*Cin)     conv_0 im2col weights, bf16
    b0_ref:   (Chid, 1)         conv_0 bias, f32
    w1_ref:   (Cout, 9*Chid)    conv_1 im2col weights * alpha, bf16
    b1_ref:   (Cout, 1)         conv_1 bias * alpha, f32 (zeros when is_bias=False)
    ws_ref:   (Cout, Cin)       1x1 shortcut weights, bf16   [only if learned_shortcut]
    out_ref:  (1, Cout, H*W)    lane-dense output
    """
    if learned_shortcut:
        ws_ref, out_ref = rest
    else:
        (out_ref,) = rest

    Hp, Wp = H + 2, W + 2
    Np = Hp * Wp
    halo = Wp + 1

    x = x_ref[0]                        # (Cin, Np) f32, zero spatial border
    xa = jnp.maximum(x, 0.0)            # actvn(x) = relu; relu(0)=0 keeps border zero

    def conv3x3(a, wmat_bf16):
        # a: (C, Np) f32 with zero spatial border (the conv's zero padding).
        # One fused (Cm, 9C) @ (9C, Np) MXU matmul replaces nine K=C dots.
        C = a.shape[0]
        zeros = jnp.zeros((C, halo), a.dtype)
        a_ext = jnp.concatenate([zeros, a, zeros], axis=1)        # (C, Np + 2*halo)
        taps = [a_ext[:, halo + dy * Wp + dx: halo + dy * Wp + dx + Np]
                for dy in (-1, 0, 1) for dx in (-1, 0, 1)]        # pure lane shifts
        im2col = jnp.concatenate(taps, axis=0).astype(jnp.bfloat16)   # (9C, Np)
        return jnp.dot(wmat_bf16, im2col, preferred_element_type=jnp.float32)

    # conv_0 on the padded frame; zero its frame border so it doubles as
    # conv_1's zero-padded input (mask is a precomputed constant).
    h = conv3x3(xa, w0_ref[...])                                  # (Chid, Np) f32
    h = jnp.maximum(h + b0_ref[...], 0.0) * mask_ref[...]

    # conv_1 (alpha and b1 already folded into w1_ref / b1_ref by the wrapper).
    y = conv3x3(h, w1_ref[...]) + b1_ref[...]                     # (Cout, Np) f32

    # Shortcut path uses the un-activated input.
    if learned_shortcut:
        xs = jnp.dot(ws_ref[...], x.astype(jnp.bfloat16),
                     preferred_element_type=jnp.float32)          # (Cout, Np)
    else:
        xs = x                                                    # Cin == Cout

    out = xs + y                                                  # (Cout, Np) f32

    # Extract the H x W interior as a lane-dense (Cout, H*W) slab:
    # H static lane slices + one lane concat (no minor-dim reshapes).
    rows = [out[:, (i + 1) * Wp + 1: (i + 1) * Wp + 1 + W] for i in range(H)]
    out_ref[0] = jnp.concatenate(rows, axis=1).astype(out_ref.dtype)


def resnet_block_forward(x_nchw, params, alpha=0.1):
    """Pallas ResnetBlock forward. x_nchw: (N, Cin, H, W) f32 -> (N, Cout, H, W) f32."""
    w0, b0 = params["w0"], params["b0"]
    w1, b1 = params["w1"], params["b1"]
    ws = params.get("ws", None)
    learned_shortcut = ws is not None

    N, Cin, H, W = x_nchw.shape
    Chid = w0.shape[-1]
    Cout = w1.shape[-1]
    if not learned_shortcut:
        assert Cin == Cout, "identity shortcut requires fin == fout"

    Hp, Wp = H + 2, W + 2
    Np = Hp * Wp
    HW = H * W

    # Input stays channel-major (no NHWC transpose). Zero-pad spatially by 1
    # and flatten the padded grid onto the lane axis (one fused pad+reshape).
    xpad = jnp.pad(x_nchw, ((0, 0), (0, 0), (1, 1), (1, 1))).reshape(N, Cin, Np)

    # Interior mask of the padded frame (compile-time constant, tiny input).
    mask = jnp.zeros((Hp, Wp), jnp.float32).at[1:-1, 1:-1].set(1.0).reshape(1, Np)

    # Fused im2col weights in bf16 for the MXU; alpha and b1 folded into conv_1.
    w0_mat = w0.reshape(9 * Cin, Chid).T.astype(jnp.bfloat16)             # (Chid, 9*Cin)
    w1_mat = (alpha * w1.reshape(9 * Chid, Cout)).T.astype(jnp.bfloat16)  # (Cout, 9*Chid)
    b0_col = b0.reshape(Chid, 1).astype(jnp.float32)
    b1_col = (alpha * b1).reshape(Cout, 1).astype(jnp.float32)

    inputs = [xpad, mask, w0_mat, b0_col, w1_mat, b1_col]
    in_specs = [
        pl.BlockSpec((1, Cin, Np), lambda n: (n, 0, 0)),
        pl.BlockSpec((1, Np), lambda n: (0, 0)),
        pl.BlockSpec((Chid, 9 * Cin), lambda n: (0, 0)),
        pl.BlockSpec((Chid, 1), lambda n: (0, 0)),
        pl.BlockSpec((Cout, 9 * Chid), lambda n: (0, 0)),
        pl.BlockSpec((Cout, 1), lambda n: (0, 0)),
    ]
    if learned_shortcut:
        ws_mat = ws.T.astype(jnp.bfloat16)                                # (Cout, Cin)
        inputs.append(ws_mat)
        in_specs.append(pl.BlockSpec((Cout, Cin), lambda n: (0, 0)))

    kernel = functools.partial(_resnet_block_kernel, H=H, W=W,
                               learned_shortcut=learned_shortcut)

    out_flat = pl.pallas_call(
        kernel,
        out_shape=jax.ShapeDtypeStruct((N, Cout, HW), jnp.float32),
        grid_spec=pltpu.PrefetchScalarGridSpec(
            num_scalar_prefetch=0,
            grid=(N,),
            in_specs=in_specs,
            out_specs=pl.BlockSpec((1, Cout, HW), lambda n: (n, 0, 0)),
        ),
        compiler_params=pltpu.CompilerParams(dimension_semantics=("parallel",)),
    )(*inputs)

    return out_flat.reshape(N, Cout, H, W)    # contiguous reshape: free


def init_params(key, fin, fout, fhidden=None, is_bias=True):
    """Deterministic synthetic parameters matching ResnetBlock.__init__ shapes."""
    if fhidden is None:
        fhidden = min(fin, fout)
    k0, k1, k2, k3, k4 = jax.random.split(key, 5)
    s0 = 1.0 / jnp.sqrt(float(fin * 9))
    s1 = 1.0 / jnp.sqrt(float(fhidden * 9))
    params = {
        "w0": jax.random.normal(k0, (3, 3, fin, fhidden), jnp.float32) * s0,
        "b0": jax.random.normal(k1, (fhidden,), jnp.float32) * 0.1,
        "w1": jax.random.normal(k2, (3, 3, fhidden, fout), jnp.float32) * s1,
        "b1": (jax.random.normal(k3, (fout,), jnp.float32) * 0.1) if is_bias
              else jnp.zeros((fout,), jnp.float32),
    }
    if fin != fout:   # learned_shortcut
        params["ws"] = jax.random.normal(k4, (fin, fout), jnp.float32) / jnp.sqrt(float(fin))
    return params


def reference_forward(x_nchw, params, alpha=0.1):
    """Pure-JAX reference (lax.conv, HIGHEST precision) for correctness checking."""
    def conv(x, w_hwio, b, pad):
        y = lax.conv_general_dilated(
            x, w_hwio, window_strides=(1, 1),
            padding=[(pad, pad), (pad, pad)],
            dimension_numbers=("NCHW", "HWIO", "NCHW"),
            precision=lax.Precision.HIGHEST)
        if b is not None:
            y = y + b[None, :, None, None]
        return y

    relu = lambda t: jnp.maximum(t, 0.0)
    if "ws" in params:
        x_s = conv(x_nchw, params["ws"][None, None], None, pad=0)
    else:
        x_s = x_nchw
    dx = conv(relu(x_nchw), params["w0"], params["b0"], pad=1)
    dx = conv(relu(dx), params["w1"], params["b1"], pad=1)
    return x_s + alpha * dx


if __name__ == "__main__":
    key = jax.random.PRNGKey(0)
    kx, kp, kx2, kp2 = jax.random.split(key, 4)

    # Config 1: learned 1x1 shortcut (fin != fout).
    N, fin, fout, H, W = 2, 4, 8, 16, 16
    x = jax.random.normal(kx, (N, fin, H, W), jnp.float32)
    params = init_params(kp, fin, fout, fhidden=None, is_bias=True)
    out = jax.block_until_ready(resnet_block_forward(x, params, alpha=0.1))
    ref = reference_forward(x, params, alpha=0.1)
    assert out.shape == (N, fout, H, W), out.shape
    # bf16 MXU operands (f32 accumulation) => ~1e-2-scale deviations vs the
    # all-f32 HIGHEST-precision reference; 3e-2 bounds that with margin.
    err1 = float(jnp.max(jnp.abs(out - ref)))
    assert err1 < 3e-2, f"learned-shortcut max abs error vs reference: {err1}"

    # Config 2: identity shortcut (fin == fout), conv_1 without bias.
    N2, f2 = 1, 8
    x2 = jax.random.normal(kx2, (N2, f2, H, W), jnp.float32)
    params2 = init_params(kp2, f2, f2, fhidden=4, is_bias=False)
    out2 = jax.block_until_ready(resnet_block_forward(x2, params2, alpha=0.1))
    ref2 = reference_forward(x2, params2, alpha=0.1)
    assert out2.shape == (N2, f2, H, W), out2.shape
    err2 = float(jnp.max(jnp.abs(out2 - ref2)))
    assert err2 < 3e-2, f"identity-shortcut max abs error vs reference: {err2}"

    print("KERNEL_OK")
</pallas_src>

<mosaic_0001>
module attributes {stable_mosaic.version = 11 : i64} {
  func.func @_resnet_block_kernel(%arg0: i32, %arg1: memref<1x4x324xf32, #tpu.memory_space<vmem>>, %arg2: memref<1x324xf32, #tpu.memory_space<vmem>>, %arg3: memref<4x36xbf16, #tpu.memory_space<vmem>>, %arg4: memref<4x1xf32, #tpu.memory_space<vmem>>, %arg5: memref<8x36xbf16, #tpu.memory_space<vmem>>, %arg6: memref<8x1xf32, #tpu.memory_space<vmem>>, %arg7: memref<8x4xbf16, #tpu.memory_space<vmem>>, %arg8: memref<1x8x256xf32, #tpu.memory_space<vmem>>) attributes {dimension_semantics = [#tpu.dimension_semantics<parallel>], iteration_bounds = array<i64: 2>, scalar_prefetch = 0 : i64, scratch_operands = 0 : i64, tpu.core_type = #tpu.core_type<tc>, window_params = [{transform_indices = @transform_0, window_bounds = array<i64: 1, 4, 324>}, {pipeline_mode = #tpu.pipeline_mode<synchronous>, transform_indices = @transform_1, window_bounds = array<i64: 1, 324>}, {pipeline_mode = #tpu.pipeline_mode<synchronous>, transform_indices = @transform_2, window_bounds = array<i64: 4, 36>}, {pipeline_mode = #tpu.pipeline_mode<synchronous>, transform_indices = @transform_3, window_bounds = array<i64: 4, 1>}, {pipeline_mode = #tpu.pipeline_mode<synchronous>, transform_indices = @transform_4, window_bounds = array<i64: 8, 36>}, {pipeline_mode = #tpu.pipeline_mode<synchronous>, transform_indices = @transform_5, window_bounds = array<i64: 8, 1>}, {pipeline_mode = #tpu.pipeline_mode<synchronous>, transform_indices = @transform_6, window_bounds = array<i64: 8, 4>}, {transform_indices = @transform_7, window_bounds = array<i64: 1, 8, 256>}]} {
    %c0 = arith.constant 0 : index
    %c0_0 = arith.constant 0 : index
    %c0_1 = arith.constant 0 : index
    %0 = vector.load %arg1[%c0, %c0_0, %c0_1] : memref<1x4x324xf32, #tpu.memory_space<vmem>>, vector<1x4x324xf32>
    %1 = vector.shape_cast %0 : vector<1x4x324xf32> to vector<4x324xf32>
    %cst = arith.constant 0.000000e+00 : f32
    %2 = vector.broadcast %cst : f32 to vector<4x324xf32>
    %3 = arith.maximumf %1, %2 : vector<4x324xf32>
    %c0_2 = arith.constant 0 : index
    %c0_3 = arith.constant 0 : index
    %4 = vector.load %arg3[%c0_2, %c0_3] : memref<4x36xbf16, #tpu.memory_space<vmem>>, vector<4x36xbf16>
    %cst_4 = arith.constant 0.000000e+00 : f32
    %5 = vector.broadcast %cst_4 : f32 to vector<4x19xf32>
    %6 = tpu.concatenate %5, %3, %5 in 1 : vector<4x19xf32>, vector<4x324xf32>, vector<4x19xf32> -> vector<4x362xf32>
    %7 = vector.extract_strided_slice %6 {offsets = [0, 0], sizes = [4, 324], strides = [1, 1]} : vector<4x362xf32> to vector<4x324xf32>
    %8 = vector.extract_strided_slice %6 {offsets = [0, 1], sizes = [4, 324], strides = [1, 1]} : vector<4x362xf32> to vector<4x324xf32>
    %9 = vector.extract_strided_slice %6 {offsets = [0, 2], sizes = [4, 324], strides = [1, 1]} : vector<4x362xf32> to vector<4x324xf32>
    %10 = vector.extract_strided_slice %6 {offsets = [0, 18], sizes = [4, 324], strides = [1, 1]} : vector<4x362xf32> to vector<4x324xf32>
    %11 = vector.extract_strided_slice %6 {offsets = [0, 19], sizes = [4, 324], strides = [1, 1]} : vector<4x362xf32> to vector<4x324xf32>
    %12 = vector.extract_strided_slice %6 {offsets = [0, 20], sizes = [4, 324], strides = [1, 1]} : vector<4x362xf32> to vector<4x324xf32>
    %13 = vector.extract_strided_slice %6 {offsets = [0, 36], sizes = [4, 324], strides = [1, 1]} : vector<4x362xf32> to vector<4x324xf32>
    %14 = vector.extract_strided_slice %6 {offsets = [0, 37], sizes = [4, 324], strides = [1, 1]} : vector<4x362xf32> to vector<4x324xf32>
    %15 = vector.extract_strided_slice %6 {offsets = [0, 38], sizes = [4, 324], strides = [1, 1]} : vector<4x362xf32> to vector<4x324xf32>
    %16 = tpu.concatenate %7, %8, %9, %10, %11, %12, %13, %14, %15 in 0 : vector<4x324xf32>, vector<4x324xf32>, vector<4x324xf32>, vector<4x324xf32>, vector<4x324xf32>, vector<4x324xf32>, vector<4x324xf32>, vector<4x324xf32>, vector<4x324xf32> -> vector<36x324xf32>
    %17 = arith.truncf %16 : vector<36x324xf32> to vector<36x324xbf16>
    %cst_5 = arith.constant dense<0.000000e+00> : vector<4x324xf32>
    %18 = tpu.matmul %4, %17, %cst_5 {dimension_numbers = #tpu.dot_dimension_numbers<[1], [0], [0], [1], [0, 0, 1, 1], [], []>} : vector<4x36xbf16>, vector<36x324xbf16>, vector<4x324xf32> -> vector<4x324xf32>
    %c0_6 = arith.constant 0 : index
    %c0_7 = arith.constant 0 : index
    %19 = vector.load %arg4[%c0_6, %c0_7] : memref<4x1xf32, #tpu.memory_space<vmem>>, vector<4x1xf32>
    %20 = vector.broadcast %19 : vector<4x1xf32> to vector<4x324xf32>
    %21 = arith.addf %18, %20 : vector<4x324xf32>
    %cst_8 = arith.constant 0.000000e+00 : f32
    %22 = vector.broadcast %cst_8 : f32 to vector<4x324xf32>
    %23 = arith.maximumf %21, %22 : vector<4x324xf32>
    %c0_9 = arith.constant 0 : index
    %c0_10 = arith.constant 0 : index
    %24 = vector.load %arg2[%c0_9, %c0_10] : memref<1x324xf32, #tpu.memory_space<vmem>>, vector<1x324xf32>
    %25 = vector.broadcast %24 : vector<1x324xf32> to vector<4x324xf32>
    %26 = arith.mulf %23, %25 : vector<4x324xf32>
    %c0_11 = arith.constant 0 : index
    %c0_12 = arith.constant 0 : index
    %27 = vector.load %arg5[%c0_11, %c0_12] : memref<8x36xbf16, #tpu.memory_space<vmem>>, vector<8x36xbf16>
    %cst_13 = arith.constant 0.000000e+00 : f32
    %28 = vector.broadcast %cst_13 : f32 to vector<4x19xf32>
    %29 = tpu.concatenate %28, %26, %28 in 1 : vector<4x19xf32>, vector<4x324xf32>, vector<4x19xf32> -> vector<4x362xf32>
    %30 = vector.extract_strided_slice %29 {offsets = [0, 0], sizes = [4, 324], strides = [1, 1]} : vector<4x362xf32> to vector<4x324xf32>
    %31 = vector.extract_strided_slice %29 {offsets = [0, 1], sizes = [4, 324], strides = [1, 1]} : vector<4x362xf32> to vector<4x324xf32>
    %32 = vector.extract_strided_slice %29 {offsets = [0, 2], sizes = [4, 324], strides = [1, 1]} : vector<4x362xf32> to vector<4x324xf32>
    %33 = vector.extract_strided_slice %29 {offsets = [0, 18], sizes = [4, 324], strides = [1, 1]} : vector<4x362xf32> to vector<4x324xf32>
    %34 = vector.extract_strided_slice %29 {offsets = [0, 19], sizes = [4, 324], strides = [1, 1]} : vector<4x362xf32> to vector<4x324xf32>
    %35 = vector.extract_strided_slice %29 {offsets = [0, 20], sizes = [4, 324], strides = [1, 1]} : vector<4x362xf32> to vector<4x324xf32>
    %36 = vector.extract_strided_slice %29 {offsets = [0, 36], sizes = [4, 324], strides = [1, 1]} : vector<4x362xf32> to vector<4x324xf32>
    %37 = vector.extract_strided_slice %29 {offsets = [0, 37], sizes = [4, 324], strides = [1, 1]} : vector<4x362xf32> to vector<4x324xf32>
    %38 = vector.extract_strided_slice %29 {offsets = [0, 38], sizes = [4, 324], strides = [1, 1]} : vector<4x362xf32> to vector<4x324xf32>
    %39 = tpu.concatenate %30, %31, %32, %33, %34, %35, %36, %37, %38 in 0 : vector<4x324xf32>, vector<4x324xf32>, vector<4x324xf32>, vector<4x324xf32>, vector<4x324xf32>, vector<4x324xf32>, vector<4x324xf32>, vector<4x324xf32>, vector<4x324xf32> -> vector<36x324xf32>
    %40 = arith.truncf %39 : vector<36x324xf32> to vector<36x324xbf16>
    %cst_14 = arith.constant dense<0.000000e+00> : vector<8x324xf32>
    %41 = tpu.matmul %27, %40, %cst_14 {dimension_numbers = #tpu.dot_dimension_numbers<[1], [0], [0], [1], [0, 0, 1, 1], [], []>} : vector<8x36xbf16>, vector<36x324xbf16>, vector<8x324xf32> -> vector<8x324xf32>
    %c0_15 = arith.constant 0 : index
    %c0_16 = arith.constant 0 : index
    %42 = vector.load %arg6[%c0_15, %c0_16] : memref<8x1xf32, #tpu.memory_space<vmem>>, vector<8x1xf32>
    %43 = vector.broadcast %42 : vector<8x1xf32> to vector<8x324xf32>
    %44 = arith.addf %41, %43 : vector<8x324xf32>
    %c0_17 = arith.constant 0 : index
    %c0_18 = arith.constant 0 : index
    %45 = vector.load %arg7[%c0_17, %c0_18] : memref<8x4xbf16, #tpu.memory_space<vmem>>, vector<8x4xbf16>
    %46 = arith.truncf %1 : vector<4x324xf32> to vector<4x324xbf16>
    %cst_19 = arith.constant dense<0.000000e+00> : vector<8x324xf32>
    %47 = tpu.matmul %45, %46, %cst_19 {dimension_numbers = #tpu.dot_dimension_numbers<[1], [0], [0], [1], [0, 0, 1, 1], [], []>} : vector<8x4xbf16>, vector<4x324xbf16>, vector<8x324xf32> -> vector<8x324xf32>
    %48 = arith.addf %47, %44 : vector<8x324xf32>
    %49 = vector.extract_strided_slice %48 {offsets = [0, 19], sizes = [8, 16], strides = [1, 1]} : vector<8x324xf32> to vector<8x16xf32>
    %50 = vector.extract_strided_slice %48 {offsets = [0, 37], sizes = [8, 16], strides = [1, 1]} : vector<8x324xf32> to vector<8x16xf32>
    %51 = vector.extract_strided_slice %48 {offsets = [0, 55], sizes = [8, 16], strides = [1, 1]} : vector<8x324xf32> to vector<8x16xf32>
    %52 = vector.extract_strided_slice %48 {offsets = [0, 73], sizes = [8, 16], strides = [1, 1]} : vector<8x324xf32> to vector<8x16xf32>
    %53 = vector.extract_strided_slice %48 {offsets = [0, 91], sizes = [8, 16], strides = [1, 1]} : vector<8x324xf32> to vector<8x16xf32>
    %54 = vector.extract_strided_slice %48 {offsets = [0, 109], sizes = [8, 16], strides = [1, 1]} : vector<8x324xf32> to vector<8x16xf32>
    %55 = vector.extract_strided_slice %48 {offsets = [0, 127], sizes = [8, 16], strides = [1, 1]} : vector<8x324xf32> to vector<8x16xf32>
    %56 = vector.extract_strided_slice %48 {offsets = [0, 145], sizes = [8, 16], strides = [1, 1]} : vector<8x324xf32> to vector<8x16xf32>
    %57 = vector.extract_strided_slice %48 {offsets = [0, 163], sizes = [8, 16], strides = [1, 1]} : vector<8x324xf32> to vector<8x16xf32>
    %58 = vector.extract_strided_slice %48 {offsets = [0, 181], sizes = [8, 16], strides = [1, 1]} : vector<8x324xf32> to vector<8x16xf32>
    %59 = vector.extract_strided_slice %48 {offsets = [0, 199], sizes = [8, 16], strides = [1, 1]} : vector<8x324xf32> to vector<8x16xf32>
    %60 = vector.extract_strided_slice %48 {offsets = [0, 217], sizes = [8, 16], strides = [1, 1]} : vector<8x324xf32> to vector<8x16xf32>
    %61 = vector.extract_strided_slice %48 {offsets = [0, 235], sizes = [8, 16], strides = [1, 1]} : vector<8x324xf32> to vector<8x16xf32>
    %62 = vector.extract_strided_slice %48 {offsets = [0, 253], sizes = [8, 16], strides = [1, 1]} : vector<8x324xf32> to vector<8x16xf32>
    %63 = vector.extract_strided_slice %48 {offsets = [0, 271], sizes = [8, 16], strides = [1, 1]} : vector<8x324xf32> to vector<8x16xf32>
    %64 = vector.extract_strided_slice %48 {offsets = [0, 289], sizes = [8, 16], strides = [1, 1]} : vector<8x324xf32> to vector<8x16xf32>
    %65 = tpu.concatenate %49, %50, %51, %52, %53, %54, %55, %56, %57, %58, %59, %60, %61, %62, %63, %64 in 1 : vector<8x16xf32>, vector<8x16xf32>, vector<8x16xf32>, vector<8x16xf32>, vector<8x16xf32>, vector<8x16xf32>, vector<8x16xf32>, vector<8x16xf32>, vector<8x16xf32>, vector<8x16xf32>, vector<8x16xf32>, vector<8x16xf32>, vector<8x16xf32>, vector<8x16xf32>, vector<8x16xf32>, vector<8x16xf32> -> vector<8x256xf32>
    %c0_20 = arith.constant 0 : index
    %c0_21 = arith.constant 0 : index
    %c0_22 = arith.constant 0 : index
    %66 = vector.load %arg8[%c0_20, %c0_21, %c0_22] : memref<1x8x256xf32, #tpu.memory_space<vmem>>, vector<1x8x256xf32>
    %67 = vector.shape_cast %66 : vector<1x8x256xf32> to vector<8x256xf32>
    %68 = vector.shape_cast %65 : vector<8x256xf32> to vector<1x8x256xf32>
    tpu.vector_store %arg8[%c0_20, %c0_21, %c0_22], %68 {strides = array<i32>} : memref<1x8x256xf32, #tpu.memory_space<vmem>>, vector<1x8x256xf32>,
    return
  }
  func.func @transform_0(%arg0: i32) -> (i32, i32, i32) {
    %c0_i32 = arith.constant 0 : i32
    %c0_i32_0 = arith.constant 0 : i32
    %c0_i32_1 = arith.constant 0 : i32
    return %arg0, %c0_i32, %c0_i32_0 : i32, i32, i32
  }
  func.func @transform_1(%arg0: i32) -> (i32, i32) {
    %c0_i32 = arith.constant 0 : i32
    %c0_i32_0 = arith.constant 0 : i32
    %c0_i32_1 = arith.constant 0 : i32
    return %c0_i32, %c0_i32_0 : i32, i32
  }
  func.func @transform_2(%arg0: i32) -> (i32, i32) {
    %c0_i32 = arith.constant 0 : i32
    %c0_i32_0 = arith.constant 0 : i32
    %c0_i32_1 = arith.constant 0 : i32
    return %c0_i32, %c0_i32_0 : i32, i32
  }
  func.func @transform_3(%arg0: i32) -> (i32, i32) {
    %c0_i32 = arith.constant 0 : i32
    %c0_i32_0 = arith.constant 0 : i32
    %c0_i32_1 = arith.constant 0 : i32
    return %c0_i32, %c0_i32_0 : i32, i32
  }
  func.func @transform_4(%arg0: i32) -> (i32, i32) {
    %c0_i32 = arith.constant 0 : i32
    %c0_i32_0 = arith.constant 0 : i32
    %c0_i32_1 = arith.constant 0 : i32
    return %c0_i32, %c0_i32_0 : i32, i32
  }
  func.func @transform_5(%arg0: i32) -> (i32, i32) {
    %c0_i32 = arith.constant 0 : i32
    %c0_i32_0 = arith.constant 0 : i32
    %c0_i32_1 = arith.constant 0 : i32
    return %c0_i32, %c0_i32_0 : i32, i32
  }
  func.func @transform_6(%arg0: i32) -> (i32, i32) {
    %c0_i32 = arith.constant 0 : i32
    %c0_i32_0 = arith.constant 0 : i32
    %c0_i32_1 = arith.constant 0 : i32
    return %c0_i32, %c0_i32_0 : i32, i32
  }
  func.func @transform_7(%arg0: i32) -> (i32, i32, i32) {
    %c0_i32 = arith.constant 0 : i32
    %c0_i32_0 = arith.constant 0 : i32
    %c0_i32_1 = arith.constant 0 : i32
    return %arg0, %c0_i32, %c0_i32_0 : i32, i32, i32
  }
}

</mosaic_0001>

<bundles_post_ra>
// kernel: tpu_custom_call.1
= control target key start
LH: loop header
LB: loop body
LE: loop exit
PB: predicated region body
PF: predicated region fallthrough
CT: control target
= control target key end

     0   :  { %12 = vsyncpa [#allocation3], 0  ;;  %s1813_s0 = inlined_call_operand.hbm [shape: f32[2,4,324], index: 0, kind: input, shape index: {}]   ;;  %s1814_s1 = inlined_call_operand.vmem [shape: f32[1,324], index: 1, kind: input, shape index: {}]   ;;  %s1815_s2 = inlined_call_operand.vmem [shape: bf16[4,36], index: 2, kind: input, shape index: {}]   ;;  %s1816_s3 = inlined_call_operand.vmem [shape: f32[4,1], index: 3, kind: input, shape index: {}]   ;;  %s1817_s4 = inlined_call_operand.vmem [shape: bf16[8,36], index: 4, kind: input, shape index: {}]   ;;  %s1818_s5 = inlined_call_operand.vmem [shape: f32[8,1], index: 5, kind: input, shape index: {}]   ;;  %s1819_s6 = inlined_call_operand.vmem [shape: bf16[8,4], index: 6, kind: input, shape index: {}]   ;;  %s1820_s7 = inlined_call_operand.hbm [shape: f32[2,8,256], index: 7, kind: output, shape index: {}]  }
   0x1   :  { %14 = vsyncpa [#allocation3 + $0x1], 0 }
   0x2   :  { %15 = vsyncpa [#allocation4], 0 }
   0x3   :  { %17 = vsyncpa [#allocation4 + $0x1], 0  ;;  %s1465_s24 = smov 0   ;;  %s1467_s25 = smov 0  }
   0x4   :  { %s1469_s26 = smov 0   ;;  %s1471_s27 = smov 0  }
   0x5 LB: > { %s1486_s28 = sadd.s32 4294967295, %s1395_s27   ;;  %s1064_s29 = sadd.s32 4294967294, %s1395_s27   ;;  %s1395_s27 = sphi %s1471_s27, %s1834_s27   ;;  %s1391_s26 = sphi %s1469_s26, %s1833_s26   ;;  %s1387_s25 = sphi %s1467_s25, %s1832_s25   ;;  %s1383_s24 = sphi %s1465_s24, %s1831_s24  }
   0x6   : > { %s1490_s30 = sadd.s32 1, %s1395_s27   ;;  %s30_s8 = sadd.s32 1, %s1391_s26 }
   0x7   : > { %s27_s9 = ssub.s32 %s1395_s27, %s1490_s30  ;;  %p37_p0 = scmp.ne.s32.totalorder %s1391_s26, %s1387_s25 }
   0x8   : > { %p28_p1 = scmp.eq.s32.totalorder %s27_s9, 0  ;;  %p38_p2 = scmp.eq.s32.totalorder %s1395_s27, 0 }
   0x9   : > { %p43_p3 = scmp.ne.s32.totalorder %s1387_s25, %s1383_s24  ;;  %p44_p4 = scmp.eq.s32.totalorder %s1486_s28, 0 }
   0xa   : > { %s1502_s10 = scalar_select %p28_p1, %s1391_s26, %s30_s8  }
   0xb   : > { %p39_p5 = por %p38_p2, %p37_p0  ;;  %p1504_p6 = por %p44_p4, %p43_p3 }
   0xc   : > { %p193_p7 = scmp.eq.s32.totalorder %s1486_s28, 1  ;;  %p199_p8 = scmp.eq.s32.totalorder %s1064_s29, 1 }
   0xd   : > { %p1147_p10 = scmp.lt.s32.totalorder %s1395_s27, 2  ;;  %s237_s14 = sand.u32 1, %s1391_s26  }
   0xe   : > { %p1511_p11 = por %p193_p7, %p37_p0  ;;  %p1515_p12 = por %p199_p8, %p43_p3 }
   0xf   : > { %s1133_s15 = smul.u32 192, %s1395_s27  ;;  %p1526_p13 = pnand %p1147_p10, %p39_p5 }
  0x10   : > { %s1823_s12 = scalar_select %p1511_p11, 1, 0 }
  0x11   : > { %s1824_s13 = scalar_select %p1515_p12, 1, 0 }
  0x12   : > { %s1132_s16 = smul.u32 12, %s237_s14  ;;  %s1524_s19 = scalar_lea.hbm %s1813_s0, %s1133_s15 }
  0x13   : > { %s238_s23 = scalar_lea.sflag [#allocation3], %s237_s14  ;;  %s1299_s29 = scalar_lea.hbm %s1524_s19, 192 }
  0x14   : > { %s241_s21 = scalar_lea.vmem [#allocation2], %s1132_s16  ;;  %p1300_p2 = scmp.ne.s32.totalorder %s1524_s19, %s1299_s29 }
  0x15   : > { %s249_s22 = sshll.u32 %s241_s21, 4  ;;  %p1301_p3 = pneg %p1526_p13  ;;  %s1531_s22 = int_to_ptr.vmem [resolvable:$true] %s249_s22 }
  0x16   : > { %s1304_s15 = scalar_lea.hbm %s1813_s0, 384  ;;  %p1305_p7 = scmp.lt.u32.totalorder %s1524_s19, %s1813_s0 }
  0x17   : > { %p1302_p4 = pnand %p1301_p3, %p1300_p2  ;;  %p1306_p8 = scmp.lt.u32.totalorder %s1304_s15, %s1299_s29 }
  0x18   : > { %p1308_p9 = scmp.lt.u32.totalorder %s1299_s29, %s1524_s19 }
  0x19   : > { %p1303_p5 = pneg %p1302_p4  ;;  %p1307_p10 = por %p1306_p8, %p1305_p7 }
  0x1b   : > { %p1309_p0 = por %p1308_p9, %p1307_p10 }
  0x1d   : > { %p1310_p1 = pnand %p1309_p0, %p1303_p5 }
  0x1f   : > { %1313 = shalt.err (!%p1310_p1)
}
  0x20   : > { %s1314_s14 = scalar_lea.vmem %s1531_s22, 192  ;;  %s1397_s16 = smov [#allocation2]  }
  0x21   : > { %p1315_p2 = scmp.ne.s32.totalorder %s1531_s22, %s1314_s14  ;;  %s1319_s21 = sshll.u32 %s1397_s16, 4  ;;  %s1320_s21 = int_to_ptr.vmem [resolvable:$false] %s1319_s21 }
  0x22   : > { %s1321_s8 = scalar_lea.vmem %s1320_s21, 384  ;;  %p1322_p11 = scmp.lt.s32.totalorder %s1531_s22, %s1320_s21 }
  0x23   : > { %p1317_p4 = pnand %p1315_p2, %p1301_p3  ;;  %p1323_p7 = scmp.lt.s32.totalorder %s1321_s8, %s1314_s14 }
  0x25   : > { %p1318_p12 = pneg %p1317_p4  ;;  %p1324_p8 = por %p1323_p7, %p1322_p11 }
  0x27   : > { %p1325_p9 = pnand %p1324_p8, %p1318_p12 }
  0x29   : > { %1328 = shalt.err (!%p1325_p9)
}
  0x2a   : > { %1142 = dma.hbm_to_vmem [thread:$0]  (!%p1526_p13), %s1524_s19, 192, %s1531_s22, %s238_s23  }
  0x2b   : > { %p1826_p0 = scmp.lt.s32.totalorder %s1395_s27, 3  ;;  %p1827_p1 = scmp.ge.s32.totalorder %s1395_s27, 1 }
  0x2d   : > { %p255_p3 = pnand %p1827_p1, %p1826_p0 }
  0x2e   : > { %s1564_s29 = sand.u32 (!%p255_p3), 1, %s1387_s25  }
  0x2f   : > { %258 = sbr.rel (%p255_p3) target bundleno = 1219 (0x4c3), region = 48  ;;  %s261_s15 = scalar_lea.sflag (!%p255_p3), [#allocation3], %s1564_s29 }
  0x30   : > { %s1134_s9 = smul.u32 (!%p255_p3), 12, %s1564_s29 }
  0x32   : > { %s264_s17 = scalar_lea.vmem (!%p255_p3), [#allocation2], %s1134_s9 }
  0x36   : > { %1374 = dma.done.wait (%p1504_p6), %s261_s15, 192  }
  0x37   : > { %1376 = vsyncadd (%p1504_p6), %s261_s15, 4294967104  ;;  %v1572_v0 = vld [vmem:[%s264_s17] sm:$0xff]  ;;  %v1574_v1 = vld [vmem:[%s264_s17 + $0x8] sm:$0xf]  ;;  %s1398_s19 = smov 19   ;;  %vm310_vm0 = vcmask 154624  }
  0x38   : > { %v298_v2 = vmax.f32 %v1572_v0, 0.0  ;;  %v299_v3 = vmax.f32 %v1574_v1, 0.0  ;;  %vm317_vm1 = vcmask 711680   ;;  %s1399_s11 = smov 126   ;;  %s1400_s20 = smov 127   ;;  %v1402_v16 = vmov 0.0  }
  0x39   : > { %s1401_s22 = smov 109   ;;  %1095 = vmatprep.subr.bf16.mxu1 %v1402_v16  ;;  %s1403_s23 = smov 110   ;;  %vm1408_vm2 = vmmov 0   ;;  %v1409_v21 = vmov 0   ;;  %v442_v22 = vld [vmem:[%s1816_s3] sm:$0xf] }
  0x3a   : > { %v303_v4 = vcombine.high %v298_v2, %v298_v2  ;;  %s1404_s18 = smov 92   ;;  %s1405_s14 = smov 108   ;;  %1101 = vmatprep.mubr.msk.bf16.mxu1 %vm1408_vm2, %v1402_v16  ;;  %494 = vmatprep.mubr.bf16.mxu0 %v1409_v21  ;;  %vm354_vm3 = vcmask 900096   ;;  %vm420_vm4 = vcmask 1043456   ;;  %vm342_vm5 = vcmask 1031168  }
  0x3b   : > { %s1406_s16 = smov 90   ;;  %s1407_s21 = smov 91   ;;  %1252 = vset.pattern.permute.xlu0 %v1409_v21  ;;  %vm330_vm6 = vcmask 1039360   ;;  %vm378_vm7 = vcmask 883712   ;;  %vm366_vm8 = vcmask 891904   ;;  %vm390_vm9 = vcmask 752640  }
  0x3c   : > { %v1207_v5 = vpack.i.bf16 %v299_v3, %v303_v4  ;;  %vm402_vm10 = vcmask 744448   ;;  %vm414_vm11 = vcmask 736256   ;;  %vm452_vm12 = vcmask 1041408   ;;  %s1411_s15 = smov 81   ;;  %s1412_s17 = smov 105  }
  0x3d   : > { %vm448_vm13 = vcmask 293888   ;;  %vm803_vm14 = vcmask 31744   ;;  %s1413_s8 = smov 107   ;;  %s1414_s9 = smov 103   ;;  %vm956_vm15 = vcmask 130048  }
  0x3e   : > { %1208 = vrot.lane.b32.xlu0 %v1207_v5, %s1398_s19  ;;  %p1828_p11 = scmp.ne.s32.totalorder %s1823_s12, 0 }
  0x42   : > { %304 = vrot.lane.b32.xlu0 %v298_v2, %s1398_s19 }
  0xb0   : > { %v1209_v6 = vpop.permute.xlu0 %1208 }
  0xb1   : > { %v1211_v7 = vunpack.i.h.bf16 %v1209_v6  ;;  %v1210_v8 = vunpack.i.l.bf16 %v1209_v6 }
  0xb3   : > { %v312_v9 = vsel %vm310_vm0, %v1210_v8, %v1211_v7 }
  0xb4   : > { %v305_v10 = vpop.permute.xlu0 %304  ;;  %v1582_v11 = vsel %vm317_vm1, %v312_v9, 0.0 }
  0xb5   : > { %v1585_v12 = vsel %vm310_vm0, %v305_v10, %v1210_v8  ;;  %v1588_v13 = vsel %vm310_vm0, 0.0, %v305_v10  ;;  %v323_v18 = vrot.slane %v1582_v11, 4 }
  0xb6   : > { %336 = vrot.lane.b32.xlu0 %v1588_v13, %s1399_s11  ;;  %v321_v14 = vrot.slane %v1588_v13, 4  ;;  %v1217_v15 = vpack.i.bf16 %v1582_v11, %v1585_v12  ;;  %v322_v17 = vrot.slane %v1585_v12, 4  ;;  %v1247_v20 = vpack.i.bf16 %v1585_v12, %v1588_v13 }
  0xb8   : > { %324 = vrot.lane.b32.xlu1 %v321_v14, %s1400_s20  ;;  %v1232_v19 = vpack.i.bf16 %v323_v18, %v322_v17 }
  0xba   : > { %1218 = vrot.lane.b32.xlu0 %v1217_v15, %s1401_s22 }
  0xbc   : > { %348 = vrot.lane.b32.xlu1 %v321_v14, %s1403_s23 }
  0xbe   : > { %1223 = vrot.lane.b32.xlu0 %v1217_v15, %s1404_s18 }
  0xc0   : > { %1213 = vrot.lane.b32.xlu1 %v1217_v15, %s1399_s11 }
  0xc2   : > { %1233 = vrot.lane.b32.xlu0 %v1232_v19, %s1403_s23 }
  0xc4   : > { %1228 = vrot.lane.b32.xlu1 %v1232_v19, %s1400_s20 }
  0xc6   : > { %360 = vrot.lane.b32.xlu0 %v1588_v13, %s1401_s22 }
  0xc8   : > { %372 = vrot.lane.b32.xlu1 %v321_v14, %s1405_s14 }
  0xca   : > { %384 = vrot.lane.b32.xlu0 %v1588_v13, %s1404_s18 }
  0xcc   : > { %1238 = vrot.lane.b32.xlu1 %v1232_v19, %s1405_s14 }
  0xce   : > { %1248 = vrot.lane.b32.xlu0 %v1247_v20, %s1406_s16 }
  0xd0   : > { %1243 = vrot.lane.b32.xlu1 %v1232_v19, %s1407_s21 }
  0xd2   : > { %445 = vperm.xlu0 %1252, %v442_v22  }
  0xd4   : > { %396 = vrot.lane.b32.xlu1 %v321_v14, %s1407_s21 }
  0xd8   : > { %412 = vrot.lane.b32.xlu1 %v1582_v11, %s1406_s16 }
 0x128   : > { %v337_v23 = vpop.permute.xlu0 %336 }
 0x12a   : > { %v325_v24 = vpop.permute.xlu1 %324 }
 0x12c   : > { %v1625_v25 = vpop.permute.xlu0 %1218 }
 0x12d   : > { %v1221_v58 = vunpack.i.h.bf16 %v1625_v25  ;;  %v1220_v59 = vunpack.i.l.bf16 %v1625_v25 }
 0x12e   : > { %v349_v26 = vpop.permute.xlu1 %348 }
 0x12f   : > { %v368_v7 = vsel %vm366_vm8, %v1220_v59, %v1221_v58 }
 0x130   : > { %v1627_v27 = vpop.permute.xlu0 %1223 }
 0x131   : > { %v1226_v60 = vunpack.i.h.bf16 %v1627_v27  ;;  %v1225_v61 = vunpack.i.l.bf16 %v1627_v27 }
 0x132   : > { %v1214_v28 = vpop.permute.xlu1 %1213 }
 0x133   : > { %v1216_v29 = vunpack.i.h.bf16 %v1214_v28  ;;  %v1215_v30 = vunpack.i.l.bf16 %v1214_v28  ;;  %v392_v8 = vsel %vm390_vm9, %v1225_v61, %v1226_v60 }
 0x134   : > { %v1234_v31 = vpop.permute.xlu0 %1233 }
 0x135   : > { %v1236_v32 = vunpack.i.h.bf16 %v1234_v31  ;;  %v1235_v33 = vunpack.i.l.bf16 %v1234_v31  ;;  %v344_v40 = vsel %vm342_vm5, %v1215_v30, %v1216_v29  ;;  %v343_v41 = vsel %vm342_vm5, %v337_v23, %v1215_v30 }
 0x136   : > { %v1229_v34 = vpop.permute.xlu1 %1228 }
 0x137   : > { %v1231_v35 = vunpack.i.h.bf16 %v1229_v34  ;;  %v1230_v36 = vunpack.i.l.bf16 %v1229_v34  ;;  %v356_v37 = vsel %vm354_vm3, %v1235_v33, %v1236_v32  ;;  %v426_v39 = vsel %vm420_vm4, %v1216_v29, %v1236_v32  ;;  %v300_v34 = vld [vmem:[%s1815_s2] sm:$0x3] }
 0x138   : > { %v361_v38 = vpop.permute.xlu0 %360  ;;  %v355_v42 = vsel %vm354_vm3, %v349_v26, %v1235_v33  ;;  %v425_v45 = vsel %vm420_vm4, %v344_v40, %v356_v37 }
 0x139   : > { %v423_v43 = vsel %vm420_vm4, %v1582_v11, %v1231_v35  ;;  %v332_v44 = vsel %vm330_vm6, %v1230_v36, %v1231_v35  ;;  %v331_v46 = vsel %vm330_vm6, %v325_v24, %v1230_v36  ;;  %v424_v51 = vsel %vm420_vm4, %v343_v41, %v355_v42 }
 0x13a   : > { %v373_v47 = vpop.permute.xlu1 %372  ;;  %v435_v48 = vpack.c.bf16 %v426_v39, %v423_v43  ;;  %v422_v49 = vsel %vm420_vm4, %v1585_v12, %v332_v44  ;;  %v421_v50 = vsel %vm420_vm4, %v1588_v13, %v331_v46  ;;  %v367_v13 = vsel %vm366_vm8, %v361_v38, %v1220_v59  ;;  %v546_v39 = vld [vmem:[%s1814_s1] sm:$0x7] }
 0x13b   : > { %v434_v52 = vpack.c.bf16 %v425_v45, %v422_v49  ;;  %v433_v53 = vpack.c.bf16 %v424_v51, %v421_v50  ;;  %v548_v35 = vlaneseq }
 0x13c   : > { %v385_v54 = vpop.permute.xlu0 %384  ;;  %1096 = vmatpush3.bf16.msra.mxu1 %v435_v48 }
 0x13d   : > { %462 = vmatprep.subr.bf16.mxu0 %v434_v52  ;;  %1097 = vmatprep.subr.bf16.mxu1 %v1402_v16  ;;  %v391_v19 = vsel %vm390_vm9, %v385_v54, %v1225_v61  ;;  %v549_v36 = vshrl.u32 %v548_v35, 7 }
 0x13e   : > { %v1239_v55 = vpop.permute.xlu1 %1238  ;;  %463 = vmatpush1.bf16.msra.mxu0 %v433_v53 }
 0x13f   : > { %v1241_v56 = vunpack.i.h.bf16 %v1239_v55  ;;  %v1240_v57 = vunpack.i.l.bf16 %v1239_v55  ;;  %v558_v37 = vsub.s32 2, %v549_v36  ;;  %v554_v40 = vsub.s32 1, %v549_v36 }
 0x140   : > { %v1249_v62 = vpop.permute.xlu0 %1248  ;;  %v550_v55 = vsub.s32 0, %v549_v36 }
 0x141   : > { %v380_v63 = vsel %vm378_vm7, %v1240_v57, %v1241_v56  ;;  %v1251_v3 = vunpack.i.h.bf16 %v1249_v62  ;;  %v1250_v4 = vunpack.i.l.bf16 %v1249_v62  ;;  %v379_v9 = vsel %vm378_vm7, %v373_v47, %v1240_v57 }
 0x142   : > { %v1244_v2 = vpop.permute.xlu1 %1243  ;;  %v429_v10 = vsel %vm420_vm4, %v1221_v58, %v1241_v56  ;;  %v428_v17 = vsel %vm420_vm4, %v368_v7, %v380_v63  ;;  %v427_v25 = vsel %vm420_vm4, %v367_v13, %v379_v9  ;;  %v559_v45 = vrot.slane %v546_v39, %v558_v37 }
 0x143   : > { %v1246_v5 = vunpack.i.h.bf16 %v1244_v2  ;;  %v1245_v6 = vunpack.i.l.bf16 %v1244_v2  ;;  %v415_v23 = vsel %vm414_vm11, %v1250_v4, %v1251_v3  ;;  %v555_v50 = vrot.slane %v546_v39, %v554_v40 }
 0x144   : > { %v439_v28 = vpack.c.bf16 %v415_v23, %v415_v23 }
 0x145   : > { %v432_v11 = vsel %vm420_vm4, %v1226_v60, %v1246_v5  ;;  %v404_v12 = vsel %vm402_vm10, %v1245_v6, %v1246_v5  ;;  %v551_v60 = vrot.slane %v546_v39, %v550_v55 }
 0x146   : > { %v397_v14 = vpop.permute.xlu1 %396  ;;  %v438_v15 = vpack.c.bf16 %v432_v11, %v429_v10  ;;  %v431_v18 = vsel %vm420_vm4, %v392_v8, %v404_v12  ;;  %v454_v33 = vsel %vm452_vm12, %v439_v28, 0 }
 0x147   : > { %v403_v20 = vsel %vm402_vm10, %v397_v14, %v1245_v6  ;;  %v437_v22 = vpack.c.bf16 %v431_v18, %v428_v17 }
 0x148   : > { %v430_v24 = vsel %vm420_vm4, %v391_v19, %v403_v20  ;;  %1098 = vmatpush3.bf16.msra.mxu1 %v438_v15  ;;  %v697_v15 = vld [vmem:[%s1818_s5] sm:$0xff] }
 0x149   : > { %464 = vmatprep.subr.bf16.mxu0 %v437_v22  ;;  %v436_v26 = vpack.c.bf16 %v430_v24, %v427_v25  ;;  %1099 = vmatprep.subr.bf16.mxu1 %v1402_v16 }
 0x14a   : > { %v413_v27 = vpop.permute.xlu1 %412 }
 0x14b   : > { %v416_v29 = vsel %vm414_vm11, %v1251_v3, %v413_v27  ;;  %v441_v30 = vpack.c.bf16 %v413_v27, %v413_v27  ;;  %465 = vmatpush1.bf16.msra.mxu0 %v436_v26 }
 0x14c   : > { %v440_v31 = vpack.c.bf16 %v416_v29, %v416_v29 }
 0x14d   : > { %v460_v32 = vsel %vm452_vm12, %v441_v30, 0 }
 0x14e   : > { %1070 = vmatprep.subr.msk.bf16.mxu0 %vm452_vm12, %v440_v31  ;;  %1100 = vmatpush3.bf16.msra.mxu1 %v460_v32 }
 0x14f   : > { %467 = vmatpush1.bf16.msra.mxu0 %v454_v33  ;;  %1105 = vmatprep.subr.bf16.mxu1 %v1402_v16 }
 0x151   : > { %1102 = vmatmul.mubr.msk.bf16.vlgmr.msra.gmra.mrb[0].mxu1 %vm448_vm13, %v300_v34  ;;  %v446_v38 = vpop.permute.xlu0 %445 }
 0x152   : > { %1071 = vmatmul.mubr.msk.bf16.vlgmr.msra.gmra.mrb[0].mxu0 %vm448_vm13, %v300_v34  ;;  %1111 = vmatprep.mubr.msk.bf16.mxu1 %vm1408_vm2, %v1402_v16 }
 0x153   : > { %747 = vmatprep.mubr.bf16.mxu0 %v1409_v21 }
 0x224   : > { %v537_v41 = vpop.f32.mrb[0].mxu1 }
 0x225   : > { %v538_v42 = vadd.f32 %v537_v41, %v446_v38  ;;  %v496_v43 = vpop.f32.mrb[0].mxu0  ;;  %v1103_v44 = vpop.f32.mrb[1].mxu1 }
 0x226   : > { %v498_v46 = vpop.f32.mrb[1].mxu0  ;;  %v540_v47 = vpop.f32.mrb[2].mxu1  ;;  %v497_v54 = vadd.f32 %v496_v43, %v446_v38 }
 0x227   : > { %v545_v48 = vmax.f32 %v538_v42, 0.0  ;;  %v499_v49 = vadd.f32 %v498_v46, %v446_v38  ;;  %v500_v51 = vpop.f32.mrb[2].mxu0  ;;  %v1104_v52 = vpop.f32.mrb[3].mxu1 }
 0x228   : > { %v501_v53 = vpop.f32.mrb[3].mxu0  ;;  %v543_v59 = vmax.f32 %v497_v54, 0.0 }
 0x229   : > { %v544_v56 = vmax.f32 %v499_v49, 0.0  ;;  %v565_v57 = vmul.f32 %v559_v45, %v545_v48 }
 0x22a   : > { %v563_v62 = vmul.f32 %v551_v60, %v543_v59 }
 0x22b   : > { %v564_v58 = vmul.f32 %v555_v50, %v544_v56 }
 0x22d   : > { %v1253_v61 = vpack.i.bf16 %v565_v57, %v564_v58 }
 0x22f   : > { %1254 = vrot.lane.b32.xlu1 %v1253_v61, %s1398_s19 }
 0x233   : > { %570 = vrot.lane.b32.xlu1 %v563_v62, %s1398_s19  ;;  %s1415_s19 = smov 97  }
 0x2a1   : > { %v1255_v63 = vpop.permute.xlu1 %1254 }
 0x2a2   : > { %v1257_v2 = vunpack.i.h.bf16 %v1255_v63  ;;  %v1256_v3 = vunpack.i.l.bf16 %v1255_v63 }
 0x2a4   : > { %v577_v4 = vsel %vm310_vm0, %v1256_v3, %v1257_v2 }
 0x2a5   : > { %v582_v5 = vsel %vm317_vm1, %v577_v4, 0.0  ;;  %v571_v6 = vpop.permute.xlu1 %570  ;;  %vm947_vm1 = vcmask 678912  }
 0x2a6   : > { %v576_v7 = vsel %vm310_vm0, %v571_v6, %v1256_v3  ;;  %v581_v8 = vsel %vm310_vm0, 0.0, %v571_v6  ;;  %v587_v12 = vrot.slane %v582_v5, 4  ;;  %vm958_vm0 = vcmask 261120  }
 0x2a7   : > { %599 = vrot.lane.b32.xlu0 %v581_v8, %s1399_s11  ;;  %v1258_v9 = vpack.i.bf16 %v582_v5, %v576_v7  ;;  %v585_v10 = vrot.slane %v581_v8, 4  ;;  %v586_v11 = vrot.slane %v576_v7, 4  ;;  %v1293_v14 = vpack.i.bf16 %v576_v7, %v581_v8 }
 0x2a9   : > { %1259 = vrot.lane.b32.xlu1 %v1258_v9, %s1399_s11  ;;  %v1273_v13 = vpack.i.bf16 %v587_v12, %v586_v11  ;;  %s1416_s11 = smov 101  }
 0x2ab   : > { %1264 = vrot.lane.b32.xlu0 %v1258_v9, %s1401_s22 }
 0x2ad   : > { %588 = vrot.lane.b32.xlu1 %v585_v10, %s1400_s20 }
 0x2af   : > { %1269 = vrot.lane.b32.xlu0 %v1258_v9, %s1404_s18 }
 0x2b1   : > { %610 = vrot.lane.b32.xlu1 %v585_v10, %s1403_s23 }
 0x2b3   : > { %1274 = vrot.lane.b32.xlu0 %v1273_v13, %s1400_s20  ;;  %s1417_s20 = smov 99  }
 0x2b5   : > { %632 = vrot.lane.b32.xlu1 %v585_v10, %s1405_s14 }
 0x2b7   : > { %1279 = vrot.lane.b32.xlu0 %v1273_v13, %s1403_s23  ;;  %s1418_s23 = smov 89  }
 0x2b9   : > { %1284 = vrot.lane.b32.xlu1 %v1273_v13, %s1405_s14  ;;  %s1421_s14 = smov 85  }
 0x2bb   : > { %621 = vrot.lane.b32.xlu0 %v581_v8, %s1401_s22 }
 0x2bd   : > { %1289 = vrot.lane.b32.xlu1 %v1273_v13, %s1407_s21 }
 0x2bf   : > { %643 = vrot.lane.b32.xlu0 %v581_v8, %s1404_s18  ;;  %s1420_s18 = smov 87  }
 0x2c1   : > { %654 = vrot.lane.b32.xlu1 %v585_v10, %s1407_s21 }
 0x2c3   : > { %1294 = vrot.lane.b32.xlu0 %v1293_v14, %s1406_s16 }
 0x2c5   : > { %669 = vrot.lane.b32.xlu1 %v582_v5, %s1406_s16  ;;  %s1410_s16 = smov 83  }
 0x2c7   : > { %700 = vperm.xlu0 %1252, %v697_v15  }
 0x319   : > { %v600_v17 = vpop.permute.xlu0 %599 }
 0x31b   : > { %v1260_v18 = vpop.permute.xlu1 %1259 }
 0x31c   : > { %v1262_v24 = vunpack.i.h.bf16 %v1260_v18  ;;  %v1261_v25 = vunpack.i.l.bf16 %v1260_v18 }
 0x31d   : > { %v1265_v19 = vpop.permute.xlu0 %1264 }
 0x31e   : > { %v605_v32 = vsel %vm342_vm5, %v600_v17, %v1261_v25  ;;  %v606_v33 = vsel %vm342_vm5, %v1261_v25, %v1262_v24  ;;  %v1267_v34 = vunpack.i.h.bf16 %v1265_v19  ;;  %v1266_v36 = vunpack.i.l.bf16 %v1265_v19 }
 0x31f   : > { %v589_v20 = vpop.permute.xlu1 %588  ;;  %v798_v17 = vcombine.high %v1572_v0, %v1572_v0  ;;  %vm966_vm5 = vcmask 785408  }
 0x320   : > { %v628_v60 = vsel %vm366_vm8, %v1266_v36, %v1267_v34 }
 0x321   : > { %v1270_v22 = vpop.permute.xlu0 %1269 }
 0x322   : > { %v1272_v37 = vunpack.i.h.bf16 %v1270_v22  ;;  %v1271_v40 = vunpack.i.l.bf16 %v1270_v22 }
 0x323   : > { %v611_v23 = vpop.permute.xlu1 %610 }
 0x324   : > { %v650_v61 = vsel %vm390_vm9, %v1271_v40, %v1272_v37 }
 0x325   : > { %v1275_v26 = vpop.permute.xlu0 %1274 }
 0x326   : > { %v1277_v27 = vunpack.i.h.bf16 %v1275_v26  ;;  %v1276_v28 = vunpack.i.l.bf16 %v1275_v26  ;;  %v802_v26 = vpack.c.bf16 %v1574_v1, %v1574_v1 }
 0x327   : > { %v633_v29 = vpop.permute.xlu1 %632 }
 0x328   : > { %v594_v30 = vsel %vm330_vm6, %v589_v20, %v1276_v28  ;;  %v595_v31 = vsel %vm330_vm6, %v1276_v28, %v1277_v27  ;;  %v678_v41 = vsel %vm420_vm4, %v582_v5, %v1277_v27  ;;  %v814_v1 = vsel %vm452_vm12, %v802_v26, 0 }
 0x329   : > { %v1280_v35 = vpop.permute.xlu0 %1279  ;;  %v677_v43 = vsel %vm420_vm4, %v576_v7, %v595_v31  ;;  %v676_v44 = vsel %vm420_vm4, %v581_v8, %v594_v30  ;;  %v800_v30 = vpack.c.bf16 %v1572_v0, %v1572_v0  ;;  %vm964_vm6 = vcmask 654336  }
 0x32a   : > { %v1282_v38 = vunpack.i.h.bf16 %v1280_v35  ;;  %v1281_v39 = vunpack.i.l.bf16 %v1280_v35 }
 0x32b   : > { %v1285_v42 = vpop.permute.xlu1 %1284  ;;  %v808_v0 = vsel %vm452_vm12, %v800_v30, 0 }
 0x32c   : > { %v681_v45 = vsel %vm420_vm4, %v1262_v24, %v1282_v38  ;;  %v616_v46 = vsel %vm354_vm3, %v611_v23, %v1281_v39  ;;  %v617_v47 = vsel %vm354_vm3, %v1281_v39, %v1282_v38  ;;  %v1287_v48 = vunpack.i.h.bf16 %v1285_v42 }
 0x32d   : > { %v690_v49 = vpack.c.bf16 %v681_v45, %v678_v41  ;;  %v1286_v50 = vunpack.i.l.bf16 %v1285_v42  ;;  %v622_v51 = vpop.permute.xlu0 %621  ;;  %v680_v52 = vsel %vm420_vm4, %v606_v33, %v617_v47  ;;  %v679_v53 = vsel %vm420_vm4, %v605_v32, %v616_v46  ;;  %v566_v33 = vld [vmem:[%s1817_s4] sm:$0xf] }
 0x32e   : > { %v689_v54 = vpack.c.bf16 %v680_v52, %v677_v43  ;;  %v688_v55 = vpack.c.bf16 %v679_v53, %v676_v44  ;;  %v684_v62 = vsel %vm420_vm4, %v1267_v34, %v1287_v48  ;;  %v627_v3 = vsel %vm366_vm8, %v622_v51, %v1266_v36  ;;  %v796_v34 = vld [vmem:[%s1819_s6] sm:$0xf] }
 0x32f   : > { %v1290_v56 = vpop.permute.xlu1 %1289  ;;  %1106 = vmatpush3.bf16.msra.mxu1 %v690_v49  ;;  %v639_v57 = vsel %vm378_vm7, %v1286_v50, %v1287_v48  ;;  %v638_v2 = vsel %vm378_vm7, %v633_v29, %v1286_v50  ;;  %v801_v29 = vpack.c.bf16 %v798_v17, %v798_v17  ;;  %vm921_vm3 = vcmask 793600  }
 0x330   : > { %v1292_v58 = vunpack.i.h.bf16 %v1290_v56  ;;  %v1291_v59 = vunpack.i.l.bf16 %v1290_v56  ;;  %715 = vmatprep.subr.bf16.mxu0 %v689_v54  ;;  %1107 = vmatprep.subr.bf16.mxu1 %v1402_v16  ;;  %v683_v8 = vsel %vm420_vm4, %v628_v60, %v639_v57  ;;  %v682_v13 = vsel %vm420_vm4, %v627_v3, %v638_v2 }
 0x331   : > { %v644_v63 = vpop.permute.xlu0 %643  ;;  %716 = vmatpush1.bf16.msra.mxu0 %v688_v55  ;;  %vm968_vm7 = vcmask 916480  }
 0x332   : > { %v687_v4 = vsel %vm420_vm4, %v1272_v37, %v1292_v58  ;;  %v661_v5 = vsel %vm402_vm10, %v1291_v59, %v1292_v58  ;;  %v649_v10 = vsel %vm390_vm9, %v644_v63, %v1271_v40 }
 0x333   : > { %v693_v6 = vpack.c.bf16 %v687_v4, %v684_v62  ;;  %v655_v7 = vpop.permute.xlu1 %654  ;;  %v686_v9 = vsel %vm420_vm4, %v650_v61, %v661_v5 }
 0x334   : > { %v660_v11 = vsel %vm402_vm10, %v655_v7, %v1291_v59  ;;  %v692_v12 = vpack.c.bf16 %v686_v9, %v683_v8 }
 0x335   : > { %v685_v14 = vsel %vm420_vm4, %v649_v10, %v660_v11  ;;  %v1295_v15 = vpop.permute.xlu0 %1294  ;;  %1108 = vmatpush3.bf16.msra.mxu1 %v693_v6  ;;  %vm962_vm4 = vcmask 523264  }
 0x336   : > { %v691_v18 = vpack.c.bf16 %v685_v14, %v682_v13  ;;  %v1297_v19 = vunpack.i.h.bf16 %v1295_v15  ;;  %v1296_v20 = vunpack.i.l.bf16 %v1295_v15  ;;  %717 = vmatprep.subr.bf16.mxu0 %v692_v12  ;;  %1109 = vmatprep.subr.bf16.mxu1 %v1402_v16 }
 0x337   : > { %v670_v22 = vpop.permute.xlu1 %669 }
 0x338   : > { %v672_v23 = vsel %vm414_vm11, %v1297_v19, %v670_v22  ;;  %v696_v24 = vpack.c.bf16 %v670_v22, %v670_v22  ;;  %718 = vmatpush1.bf16.msra.mxu0 %v691_v18  ;;  %v671_v25 = vsel %vm414_vm11, %v1296_v20, %v1297_v19 }
 0x339   : > { %v695_v27 = vpack.c.bf16 %v672_v23, %v672_v23  ;;  %v694_v28 = vpack.c.bf16 %v671_v25, %v671_v25 }
 0x33a   : > { %v713_v31 = vsel %vm452_vm12, %v696_v24, 0 }
 0x33b   : > { %1073 = vmatprep.subr.msk.bf16.mxu0 %vm452_vm12, %v695_v27  ;;  %1110 = vmatpush3.bf16.msra.mxu1 %v713_v31  ;;  %v707_v32 = vsel %vm452_vm12, %v694_v28, 0 }
 0x33c   : > { %720 = vmatpush1.bf16.msra.mxu0 %v707_v32  ;;  %1115 = vmatprep.subr.bf16.mxu1 %v1402_v16 }
 0x33d   : > { %1076 = vmatprep.subr.msk.bf16.mxu0 %vm452_vm12, %v801_v29 }
 0x33e   : > { %1112 = vmatmul.mubr.msk.bf16.vlgmr.msra.gmra.mrb[4].mxu1 %vm448_vm13, %v566_v33 }
 0x33f   : > { %1074 = vmatmul.mubr.msk.bf16.vlgmr.msra.gmra.mrb[4].mxu0 %vm448_vm13, %v566_v33  ;;  %1116 = vmatpush3.bf16.msra.mxu1 %v814_v1 }
 0x340   : > { %817 = vmatpush1.bf16.msra.mxu0 %v808_v0  ;;  %1117 = vmatprep.mubr.msk.bf16.mxu1 %vm1408_vm2, %v1402_v16  ;;  %vm960_vm2 = vcmask 392192  }
 0x341   : > { %848 = vmatprep.mubr.bf16.mxu0 %v1409_v21 }
 0x346   : > { %v701_v35 = vpop.permute.xlu0 %700 }
 0x34a   : > { %1118 = vmatmul.mubr.msk.bf16.vlgmr.msra.gmra.mrb[4].mxu1 %vm803_vm14, %v796_v34 }
 0x34b   : > { %1077 = vmatmul.mubr.msk.bf16.vlgmr.msra.gmra.mrb[4].mxu0 %vm803_vm14, %v796_v34 }
 0x41d   : > { %v891_v36 = vpop.f32.mrb[4].mxu1 }
 0x41e   : > { %v1123_v37 = vadd.f32 %v891_v36, %v701_v35  ;;  %v850_v38 = vpop.f32.mrb[4].mxu0  ;;  %v1119_v39 = vpop.f32.mrb[5].mxu1 }
 0x41f   : > { %v1121_v40 = vadd.f32 %v850_v38, %v701_v35  ;;  %v852_v41 = vpop.f32.mrb[5].mxu0  ;;  %v894_v42 = vpop.f32.mrb[6].mxu1 }
 0x420   : > { %945 = vrot.lane.b32.xlu0 %v1123_v37, %s1410_s16  ;;  %v854_v16 = vpop.f32.mrb[6].mxu0  ;;  %v1120_v43 = vpop.f32.mrb[7].mxu1  ;;  %v1122_v44 = vadd.f32 %v852_v41, %v701_v35 }
 0x421   : > { %v855_v21 = vpop.f32.mrb[7].mxu0  ;;  %898 = vrot.lane.b32.xlu1 %v1121_v40, %s1401_s22  ;;  %s1419_s22 = smov 93  }
 0x424   : > { %950 = vrot.lane.b32.xlu0 %v1123_v37, %s1411_s15  ;;  %s1422_s15 = smov 79  }
 0x425   : > { %904 = vrot.lane.b32.xlu1 %v1121_v40, %s1412_s17  ;;  %s1423_s17 = smov 95  }
 0x428   : > { %901 = vrot.lane.b32.xlu0 %v1121_v40, %s1413_s8 }
 0x429   : > { %907 = vrot.lane.b32.xlu1 %v1121_v40, %s1414_s9  ;;  %s1084_s9 = sshll.u32 %s1486_s28, 8  ;;  %s980_s28 = scalar_lea.sflag [#allocation4], %s1564_s29 }
 0x42c   : > { %917 = vrot.lane.b32.xlu0 %v1121_v40, %s1415_s19 }
 0x42d   : > { %910 = vrot.lane.b32.xlu1 %v1121_v40, %s1416_s11 }
 0x430   : > { %930 = vrot.lane.b32.xlu0 %v1122_v44, %s1407_s21  ;;  %s1069_s21 = sshll.u32 %s1564_s29, 4 }
 0x431   : > { %913 = vrot.lane.b32.xlu1 %v1121_v40, %s1417_s20  ;;  %s1769_s20 = scalar_lea.hbm %s1820_s7, %s1084_s9 }
 0x434   : > { %933 = vrot.lane.b32.xlu0 %v1122_v44, %s1418_s23 }
 0x435   : > { %927 = vrot.lane.b32.xlu1 %v1122_v44, %s1419_s22  ;;  %s1424_s22 = smov [#allocation5]  }
 0x438   : > { %936 = vrot.lane.b32.xlu0 %v1122_v44, %s1420_s18  ;;  %s1333_s18 = sshll.u32 %s1424_s22, 4  ;;  %s1334_s18 = int_to_ptr.vmem [resolvable:$false] %s1333_s18 }
 0x439   : > { %943 = vrot.lane.b32.xlu1 %v1122_v44, %s1410_s16  ;;  %s294_s16 = scalar_lea.vmem [#allocation5], %s1069_s21 }
 0x43a   : > { %s994_s8 = sshll.u32 %s294_s16, 4  ;;  %s1771_s8 = int_to_ptr.vmem [resolvable:$true] %s994_s8 }
 0x43b   : > { %s1329_s23 = scalar_lea.vmem %s1771_s8, 256  ;;  %p1336_p5 = scmp.lt.s32.totalorder %s1771_s8, %s1334_s18 }
 0x43c   : > { %939 = vrot.lane.b32.xlu0 %v1122_v44, %s1421_s14  ;;  %p1330_p6 = scmp.ne.s32.totalorder %s1771_s8, %s1329_s23  ;;  %s1335_s14 = scalar_lea.vmem %s1334_s18, 512 }
 0x43d   : > { %919 = vrot.lane.b32.xlu1 %v1122_v44, %s1415_s19  ;;  %p1337_p10 = scmp.lt.s32.totalorder %s1335_s14, %s1329_s23 }
 0x43e   : > { %p1331_p12 = pnand %p1330_p6, %p1828_p11 }
 0x43f   : > { %p1338_p2 = por %p1337_p10, %p1336_p5 }
 0x440   : > { %953 = vrot.lane.b32.xlu0 %v1123_v37, %s1422_s15  ;;  %p1332_p13 = pneg %p1331_p12 }
 0x441   : > { %924 = vrot.lane.b32.xlu1 %v1122_v44, %s1423_s17 }
 0x442   : > { %p1339_p4 = pnand %p1338_p2, %p1332_p13 }
 0x492   : > { %v946_v45 = vpop.permute.xlu0 %945 }
 0x493   : > { %v899_v46 = vpop.permute.xlu1 %898 }
 0x496   : > { %v951_v47 = vpop.permute.xlu0 %950 }
 0x497   : > { %v905_v48 = vpop.permute.xlu1 %904 }
 0x49a   : > { %v902_v49 = vpop.permute.xlu0 %901 }
 0x49b   : > { %v908_v50 = vpop.permute.xlu1 %907  ;;  %v957_v58 = vsel %vm956_vm15, %v899_v46, %v902_v49 }
 0x49c   : > { %v959_v62 = vsel %vm958_vm0, %v957_v58, %v905_v48 }
 0x49d   : > { %v961_v6 = vsel %vm960_vm2, %v959_v62, %v908_v50 }
 0x49e   : > { %v918_v51 = vpop.permute.xlu0 %917 }
 0x49f   : > { %v911_v52 = vpop.permute.xlu1 %910 }
 0x4a0   : > { %v963_v9 = vsel %vm962_vm4, %v961_v6, %v911_v52 }
 0x4a2   : > { %v931_v53 = vpop.permute.xlu0 %930 }
 0x4a3   : > { %v914_v54 = vpop.permute.xlu1 %913 }
 0x4a4   : > { %v965_v11 = vsel %vm964_vm6, %v963_v9, %v914_v54 }
 0x4a6   : > { %v934_v55 = vpop.permute.xlu0 %933 }
 0x4a7   : > { %v928_v56 = vpop.permute.xlu1 %927 }
 0x4a8   : > { %v970_v57 = vsel %vm956_vm15, %v928_v56, %v931_v53 }
 0x4a9   : > { %v971_v60 = vsel %vm958_vm0, %v970_v57, %v934_v55 }
 0x4aa   : > { %v937_v59 = vpop.permute.xlu0 %936 }
 0x4ab   : > { %v944_v61 = vpop.permute.xlu1 %943  ;;  %v972_v63 = vsel %vm960_vm2, %v971_v60, %v937_v59 }
 0x4ac   : > { %v948_v3 = vsel %vm947_vm1, %v944_v61, %v946_v45 }
 0x4ae   : > { %v940_v2 = vpop.permute.xlu0 %939 }
 0x4af   : > { %v973_v4 = vsel %vm962_vm4, %v972_v63, %v940_v2  ;;  %v920_v5 = vpop.permute.xlu1 %919 }
 0x4b0   : > { %v974_v7 = vsel %vm964_vm6, %v973_v4, %v948_v3  ;;  %v922_v8 = vsel %vm921_vm3, %v918_v51, %v920_v5 }
 0x4b1   : > { %v975_v10 = vsel %vm966_vm5, %v974_v7, %v951_v47  ;;  %v967_v14 = vsel %vm966_vm5, %v965_v11, %v922_v8 }
 0x4b2   : > { %v954_v12 = vpop.permute.xlu0 %953 }
 0x4b3   : > { %v976_v13 = vsel %vm968_vm7, %v975_v10, %v954_v12  ;;  %v925_v15 = vpop.permute.xlu1 %924 }
 0x4b4   : > { %978 = vst [vmem:[%s294_s16 + $0x8] sm:$0xff] %v976_v13  ;;  %v969_v17 = vsel %vm968_vm7, %v967_v14, %v925_v15 }
 0x4b5   : > { %977 = vst [vmem:[%s294_s16] sm:$0xff] %v969_v17 }
 0x4b6   : > { %1342 = shalt.err (!%p1339_p4)
}
 0x4b7   : > { %s1343_s29 = scalar_lea.hbm %s1769_s20, 256  ;;  %s1347_s21 = scalar_lea.hbm %s1820_s7, 512 }
 0x4b8   : > { %p1344_p7 = scmp.ne.s32.totalorder %s1769_s20, %s1343_s29  ;;  %p1348_p0 = scmp.lt.u32.totalorder %s1769_s20, %s1820_s7 }
 0x4b9   : > { %p1349_p1 = scmp.lt.u32.totalorder %s1347_s21, %s1343_s29  ;;  %p1351_p6 = scmp.lt.u32.totalorder %s1343_s29, %s1769_s20 }
 0x4ba   : > { %p1345_p8 = pnand %p1344_p7, %p1828_p11 }
 0x4bb   : > { %p1350_p3 = por %p1349_p1, %p1348_p0 }
 0x4bc   : > { %p1346_p9 = pneg %p1345_p8 }
 0x4bd   : > { %p1352_p12 = por %p1351_p6, %p1350_p3 }
 0x4bf   : > { %p1353_p13 = pnand %p1352_p12, %p1346_p9 }
 0x4c1   : > { %1356 = shalt.err (!%p1353_p13)
}
 0x4c2   : > { %1137 = dma.vmem_to_hbm [thread:$0]  (%p1828_p11), %s1771_s8, 256, %s1769_s20, %s980_s28  }
 0x4c3 PF: > { %s1006_s19 = sand.u32 1, %s1383_s24   ;;  %p1829_p5 = scmp.ne.s32.totalorder %s1824_s13, 0 }
 0x4c4   : > { %p1830_p10 = scmp.ge.s32.totalorder %s1395_s27, 2  ;;  %s1007_s11 = scalar_lea.sflag [#allocation4], %s1006_s19 }
 0x4c6   : > { %p1144_p2 = pnand %p1830_p10, %p1829_p5 }
 0x4c8   : > { %1378 = dma.done.wait (!%p1144_p2), %s1007_s11, 256  }
 0x4c9   : > { %1380 = vsyncadd (!%p1144_p2), %s1007_s11, 4294967040  ;;  %p20_p4 = scmp.ge.s32.totalorder %s1490_s30, 4   ;;  %s1831_s24 = smov %s1387_s25 }
 0x4ca   : > { %s1832_s25 = smov %s1391_s26  ;;  %s1833_s26 = smov %s1502_s10 }
 0x4cb   : > { %s1834_s27 = smov %s1490_s30  ;;  %22 = sbr.rel (!%p20_p4) target bundleno = 5 (0x5), region = 93 }
 0x4d2   :  { %1012 = vsyncpa [#allocation3], 1 }
 0x4d3   :  { %1014 = vsyncpa [#allocation3 + $0x1], 1 }
 0x4d4   :  { %1015 = vsyncpa [#allocation4], 1 }
 0x4d5   :  { %1017 = vsyncpa [#allocation4 + $0x1], 1 }

</bundles_post_ra>
